<compile_context>
chip_gen: v5e
topology: v5e:2x2
jax: 0.10.0
libtpu: 0.0.40
codegen_flags: <defaults>
</compile_context>

<pallas_src>
import math

import jax
import jax.numpy as jnp
from jax.experimental import pallas as pl
from jax.experimental.pallas import tpu as pltpu


def _fused_dot_kernel(x_ref, w_ref, o_ref):
    # x_ref: (KH, B_t, D)  w_ref: (KH, 1, D)  o_ref: (KH, B_t)
    x = x_ref[...]
    w = w_ref[...]
    # VPU multiply in the native dtype (bf16 stays bf16 on v6e/v7x),
    # f32 accumulation for the lane reduction.
    prod = (x * w).astype(jnp.float32)
    o_ref[...] = jnp.sum(prod, axis=-1).astype(o_ref.dtype)


def _pick_b_tile(kh, b, d, itemsize):
    """Pick a B tile: full B if it fits a ~4 MiB x-tile budget, else the largest
    multiple of 128 that divides B (lane-dense output blocks need 128-multiples)."""
    budget_bytes = 4 * 1024 * 1024  # 2x (double buffer) stays well under v7x scoped VMEM
    max_rows = max(1, budget_bytes // max(1, kh * d * itemsize))
    if b <= max_rows:
        return b
    b_t = (max_rows // 128) * 128
    while b_t >= 128 and b % b_t != 0:
        b_t -= 128
    if b_t < 128:
        return b  # odd batch size: fall back to a single full-B block
    return b_t


def _fused_dot(X, W):
    """X: (KH, B, D), W: (KH, 1, D) -> (KH, B) with out[s, b] = sum_d X[s,b,d]*W[s,0,d]."""
    KH, B, D = X.shape
    itemsize = jnp.dtype(X.dtype).itemsize
    B_t = _pick_b_tile(KH, B, D, itemsize)
    grid = (B // B_t,)

    return pl.pallas_call(
        _fused_dot_kernel,
        out_shape=jax.ShapeDtypeStruct((KH, B), X.dtype),
        grid=grid,
        in_specs=[
            pl.BlockSpec((KH, B_t, D), lambda j: (0, j, 0)),
            pl.BlockSpec((KH, 1, D), lambda j: (0, 0, 0)),  # weights stay resident
        ],
        out_specs=pl.BlockSpec((KH, B_t), lambda j: (0, j)),
        compiler_params=pltpu.CompilerParams(
            dimension_semantics=("parallel",)),
    )(X, W)


def dot_product_module_dict(x_dict, param_dict, num_heads):
    """Mirrors old_0_DotProductModuleDict.forward with a single fused Pallas launch."""
    keys = list(x_dict.keys())
    if not keys:
        return {}

    # Normalize every key to x: (B, H, D_k), w: (H, D_k)  (H = 1 when num_heads is None).
    xs, ws = [], []
    for k in keys:
        x = x_dict[k]
        w = param_dict[k]
        if num_heads is None:
            x = x[:, None, :]
            w = w[None, :]
        xs.append(x)
        ws.append(w)

    B, H = xs[0].shape[0], xs[0].shape[1]
    K = len(keys)
    D_max = max(x.shape[-1] for x in xs)
    out_dtype = jnp.result_type(*[x.dtype for x in xs])

    # Stack (key, head) slabs: X (K*H, B, D_max), W (K*H, 1, D_max); zero-pad D.
    x_slabs, w_slabs = [], []
    for x, w in zip(xs, ws):
        D = x.shape[-1]
        xt = jnp.transpose(x, (1, 0, 2)).astype(out_dtype)   # (H, B, D)
        wt = w.astype(out_dtype)[:, None, :]                 # (H, 1, D)
        if D < D_max:
            xt = jnp.pad(xt, ((0, 0), (0, 0), (0, D_max - D)))
            wt = jnp.pad(wt, ((0, 0), (0, 0), (0, D_max - D)))
        x_slabs.append(xt)
        w_slabs.append(wt)
    X = jnp.concatenate(x_slabs, axis=0)   # (K*H, B, D_max)
    W = jnp.concatenate(w_slabs, axis=0)   # (K*H, 1, D_max)

    out = _fused_dot(X, W)                          # (K*H, B), lane-dense
    out = jnp.transpose(out.reshape(K, H, B), (0, 2, 1))  # (K, B, H) — tiny wrapper plumbing

    out_dict = {}
    for i, k in enumerate(keys):
        out_dict[k] = out[i, :, 0] if num_heads is None else out[i]
    return out_dict


def glorot_init(key, shape, dtype=jnp.float32):
    """torch_geometric-style glorot: uniform(-s, s), s = sqrt(6/(fan_in+fan_out))."""
    if len(shape) >= 2:
        fan = shape[-2] + shape[-1]
    else:
        fan = 1 + shape[-1]
    s = math.sqrt(6.0 / fan)
    return jax.random.uniform(key, shape, dtype=dtype, minval=-s, maxval=s)


if __name__ == "__main__":
    key = jax.random.PRNGKey(0)

    # Synthetic "Irreps" dict: every entry is a multiplicity of 0e scalars,
    # so each key just has a scalar feature dimension D (which may differ per key).
    feature_dims = {"node": 32, "edge": 64}  # irreps like "32x0e", "64x0e"
    num_heads = 4
    batch = 8

    # Deterministic parameter init (glorot), shape (num_heads, D) per key.
    param_dict = {}
    x_dict = {}
    for k, D in feature_dims.items():
        key, kp, kx = jax.random.split(key, 3)
        param_dict[k] = glorot_init(kp, (num_heads, D))
        x_dict[k] = jax.random.normal(kx, (batch, num_heads, D), dtype=jnp.float32)

    out_dict = dot_product_module_dict(x_dict, param_dict, num_heads)
    out_dict = jax.tree_util.tree_map(jax.block_until_ready, out_dict)

    # Cross-check against plain JAX reference.
    for k in feature_dims:
        ref = jnp.sum(x_dict[k] * param_dict[k][None, :, :], axis=-1)
        assert out_dict[k].shape == (batch, num_heads)
        assert jnp.allclose(out_dict[k], ref, atol=1e-5, rtol=1e-5)

    # Also exercise the num_heads=None path (input (B, D), param (D,)), both keys.
    param_none = {}
    x_none = {}
    for k, D in feature_dims.items():
        key, kp2, kx2 = jax.random.split(key, 3)
        param_none[k] = glorot_init(kp2, (D,))
        x_none[k] = jax.random.normal(kx2, (batch, D), dtype=jnp.float32)
    out_none = dot_product_module_dict(x_none, param_none, None)
    out_none = jax.tree_util.tree_map(jax.block_until_ready, out_none)
    for k, D in feature_dims.items():
        ref_none = jnp.sum(x_none[k] * param_none[k][None, :], axis=-1)
        assert out_none[k].shape == (batch,)
        assert jnp.allclose(out_none[k], ref_none, atol=1e-5, rtol=1e-5)

    print("KERNEL_OK")
</pallas_src>

<mosaic_0001>
module attributes {stable_mosaic.version = 11 : i64} {
  func.func @_fused_dot_kernel(%arg0: i32, %arg1: memref<8x8x64xf32, #tpu.memory_space<vmem>>, %arg2: memref<8x1x64xf32, #tpu.memory_space<vmem>>, %arg3: memref<8x8xf32, #tpu.memory_space<vmem>>) attributes {dimension_semantics = [#tpu.dimension_semantics<parallel>], iteration_bounds = array<i64: 1>, scalar_prefetch = 0 : i64, scratch_operands = 0 : i64, tpu.core_type = #tpu.core_type<tc>, window_params = [{transform_indices = @transform_0, window_bounds = array<i64: 8, 8, 64>}, {pipeline_mode = #tpu.pipeline_mode<synchronous>, transform_indices = @transform_1, window_bounds = array<i64: 8, 1, 64>}, {transform_indices = @transform_2, window_bounds = array<i64: 8, 8>}]} {
    %c0 = arith.constant 0 : index
    %c0_0 = arith.constant 0 : index
    %c0_1 = arith.constant 0 : index
    %0 = vector.load %arg1[%c0, %c0_0, %c0_1] : memref<8x8x64xf32, #tpu.memory_space<vmem>>, vector<8x8x64xf32>
    %c0_2 = arith.constant 0 : index
    %c0_3 = arith.constant 0 : index
    %c0_4 = arith.constant 0 : index
    %1 = vector.load %arg2[%c0_2, %c0_3, %c0_4] : memref<8x1x64xf32, #tpu.memory_space<vmem>>, vector<8x1x64xf32>
    %2 = vector.broadcast %1 : vector<8x1x64xf32> to vector<8x8x64xf32>
    %3 = arith.mulf %0, %2 : vector<8x8x64xf32>
    %cst = arith.constant dense<0.000000e+00> : vector<8x8xf32>
    %4 = vector.multi_reduction <add>, %3, %cst [2] : vector<8x8x64xf32> to vector<8x8xf32>
    %c0_5 = arith.constant 0 : index
    %c0_6 = arith.constant 0 : index
    %5 = vector.load %arg3[%c0_5, %c0_6] : memref<8x8xf32, #tpu.memory_space<vmem>>, vector<8x8xf32>
    tpu.vector_store %arg3[%c0_5, %c0_6], %4 {strides = array<i32>} : memref<8x8xf32, #tpu.memory_space<vmem>>, vector<8x8xf32>,
    return
  }
  func.func @transform_0(%arg0: i32) -> (i32, i32, i32) {
    %c0_i32 = arith.constant 0 : i32
    %c0_i32_0 = arith.constant 0 : i32
    %c0_i32_1 = arith.constant 0 : i32
    return %c0_i32, %arg0, %c0_i32_0 : i32, i32, i32
  }
  func.func @transform_1(%arg0: i32) -> (i32, i32, i32) {
    %c0_i32 = arith.constant 0 : i32
    %c0_i32_0 = arith.constant 0 : i32
    %c0_i32_1 = arith.constant 0 : i32
    %c0_i32_2 = arith.constant 0 : i32
    return %c0_i32, %c0_i32_0, %c0_i32_1 : i32, i32, i32
  }
  func.func @transform_2(%arg0: i32) -> (i32, i32) {
    %c0_i32 = arith.constant 0 : i32
    %c0_i32_0 = arith.constant 0 : i32
    return %c0_i32, %arg0 : i32, i32
  }
}

</mosaic_0001>

<bundles_post_ra>
// kernel: tpu_custom_call.1
= control target key start
LH: loop header
LB: loop body
LE: loop exit
PB: predicated region body
PF: predicated region fallthrough
CT: control target
= control target key end

     0   :  { %7 = vsyncpa [#allocation3], 0  ;;  %s302_s0 = inlined_call_operand.hbm [shape: f32[8,8,64], index: 0, kind: input, shape index: {}]   ;;  %s303_s1 = inlined_call_operand.hbm [shape: f32[8,1,64], index: 1, kind: input, shape index: {}]   ;;  %s304_s2 = inlined_call_operand.hbm [shape: f32[8,8], index: 2, kind: output, shape index: {}]  }
   0x1   :  { %8 = vsyncpa [#allocation6], 0 }
   0x2   :  { %9 = vsyncpa [#allocation4], 0  ;;  %s14_s11 = sshll.u32 %s302_s0, 4  ;;  %s263_s12 = smov [#allocation2]   ;;  %s15_s11 = int_to_ptr.hbm [resolvable:$true] %s14_s11 }
   0x3   :  { %s16_s13 = sshll.u32 %s263_s12, 4  ;;  %s27_s16 = sshll.u32 %s303_s1, 4  ;;  %s17_s13 = int_to_ptr.vmem [resolvable:$true] %s16_s13  ;;  %s28_s16 = int_to_ptr.hbm [resolvable:$true] %s27_s16 }
   0x4   :  { %s264_s17 = smov 128   ;;  %s265_s18 = smov 8  }
   0x5   :  { %22 = dma.hbm_to_vmem [thread:$0]  %s15_s11, 1024, %s17_s13, [#allocation3], %s264_s17, %s264_s17, %s265_s18  }
   0x6   :  { %s266_s19 = smov [#allocation5]   ;;  %s267_s21 = smov 16  }
   0x7   :  { %s29_s20 = sshll.u32 %s266_s19, 4  ;;  %s268_s22 = smov 1   ;;  %s30_s20 = int_to_ptr.vmem [resolvable:$true] %s29_s20 }
   0x8   :  { %35 = dma.hbm_to_vmem [thread:$0]  %s28_s16, 128, %s30_s20, [#allocation6], %s267_s21, %s267_s21, %s268_s22  }
   0x9   :  { %257 = dma.done.wait [#allocation3], 1024  }
   0xa   :  { %258 = vsyncadd [#allocation3], 4294966272 }
   0xb   :  { %259 = dma.done.wait [#allocation6], 128  }
   0xc   :  { %260 = vsyncadd [#allocation6], 4294967168  ;;  %v44_v0 = vld [vmem:[#allocation2] sm:$0xff]  ;;  %vm92_vm0 = vcmask 523264   ;;  %v46_v2 = vld [vmem:[#allocation2 + $0x10] sm:$0xff]  ;;  %v125_v33 = vlaneseq  ;;  %vm135_vm1 = vcmask 1041409  }
   0xd   :  { %v177_v1 = vld [vmem:[#allocation5] ss:$0 sm:$0xff]  ;;  %v178_v3 = vld [vmem:[#allocation5 + $0x2] ss:$0 sm:$0xff]  ;;  %v179_v6 = vld [vmem:[#allocation5 + $0x4] ss:$0 sm:$0xff] }
   0xe   :  { %v84_v4 = vmul.f32 %v177_v1, %v44_v0  ;;  %v48_v5 = vld [vmem:[#allocation2 + $0x20] sm:$0xff]  ;;  %v86_v7 = vmul.f32 %v178_v3, %v46_v2  ;;  %v45_v8 = vld [vmem:[#allocation2 + $0x8] sm:$0xff]  ;;  %v47_v12 = vld [vmem:[#allocation2 + $0x18] sm:$0xff]  ;;  %v126_v36 = vand.u32 127, %v125_v33  ;;  %vm137_vm2 = vcmask 1042434   ;;  %s269_s0 = smov [#allocation7]  }
   0xf   :  { %v180_v9 = vld [vmem:[#allocation5 + $0x1] ss:$0 sm:$0xff]  ;;  %v88_v11 = vmul.f32 %v179_v6, %v48_v5  ;;  %v181_v13 = vld [vmem:[#allocation5 + $0x3] ss:$0 sm:$0xff]  ;;  %v49_v15 = vld [vmem:[#allocation2 + $0x28] sm:$0xff]  ;;  %vm139_vm3 = vcmask 1043459  }
  0x10   :  { %v93_v10 = vsel %vm92_vm0, %v84_v4, 0.0  ;;  %v99_v14 = vsel %vm92_vm0, %v86_v7, 0.0  ;;  %v182_v16 = vld [vmem:[#allocation5 + $0x5] ss:$0 sm:$0xff]  ;;  %v85_v18 = vmul.f32 %v180_v9, %v45_v8  ;;  %v87_v19 = vmul.f32 %v181_v13, %v47_v12  ;;  %v183_v22 = vld [vmem:[#allocation5 + $0x6] ss:$0 sm:$0xff] }
  0x11   :  { %94 = vadd.xlane.f32.xlu0 %v93_v10  ;;  %100 = vadd.xlane.f32.xlu1 %v99_v14  ;;  %v105_v17 = vsel %vm92_vm0, %v88_v11, 0.0  ;;  %v89_v20 = vmul.f32 %v182_v16, %v49_v15  ;;  %v50_v24 = vld [vmem:[#allocation2 + $0x30] sm:$0xff]  ;;  %v184_v25 = vld [vmem:[#allocation5 + $0x7] ss:$0 sm:$0xff]  ;;  %v51_v27 = vld [vmem:[#allocation2 + $0x38] sm:$0xff]  ;;  %vm141_vm4 = vcmask 1044484  }
  0x12   :  { %106 = vadd.xlane.f32.xlu2 %v105_v17  ;;  %v96_v21 = vsel %vm92_vm0, %v85_v18, 0.0  ;;  %v102_v23 = vsel %vm92_vm0, %v87_v19, 0.0  ;;  %v90_v28 = vmul.f32 %v183_v22, %v50_v24  ;;  %v91_v29 = vmul.f32 %v184_v25, %v51_v27  ;;  %s157_s1 = sshll.u32 %s269_s0, 4  ;;  %s159_s25 = sshll.u32 %s304_s2, 4  ;;  %s158_s1 = int_to_ptr.vmem [resolvable:$true] %s157_s1  ;;  %s160_s25 = int_to_ptr.hbm [resolvable:$true] %s159_s25 }
  0x13   :  { %v108_v26 = vsel %vm92_vm0, %v89_v20, 0.0  ;;  %vm143_vm5 = vcmask 1045509   ;;  %vm145_vm6 = vcmask 1046534   ;;  %vm147_vm7 = vcmask 1047559  }
  0x14   :  { %v111_v30 = vsel %vm92_vm0, %v90_v28, 0.0  ;;  %v114_v31 = vsel %vm92_vm0, %v91_v29, 0.0  ;;  %vm150_vm8 = vcmask 64512  }
  0x19   :  { %97 = vadd.xlane.f32.xlu0 %v96_v21  ;;  %103 = vadd.xlane.f32.xlu1 %v102_v23 }
  0x1a   :  { %109 = vadd.xlane.f32.xlu2 %v108_v26 }
  0x21   :  { %112 = vadd.xlane.f32.xlu0 %v111_v30  ;;  %115 = vadd.xlane.f32.xlu1 %v114_v31 }
  0x84   :  { %v95_v32 = vpop.xlane.xlu0 %94  ;;  %v101_v34 = vpop.xlane.xlu1 %100 }
  0x85   :  { %v107_v35 = vpop.xlane.xlu2 %106  ;;  %v127_v38 = vperm.slane %v95_v32, %v126_v36  ;;  %v129_v41 = vperm.slane %v101_v34, %v126_v36 }
  0x86   :  { %v131_v46 = vperm.slane %v107_v35, %v126_v36 }
  0x8c   :  { %v98_v37 = vpop.xlane.xlu0 %97  ;;  %v104_v40 = vpop.xlane.xlu1 %103 }
  0x8d   :  { %v128_v39 = vperm.slane %v98_v37, %v126_v36  ;;  %v130_v42 = vperm.slane %v104_v40, %v126_v36  ;;  %v110_v44 = vpop.xlane.xlu2 %109 }
  0x8e   :  { %v132_v48 = vperm.slane %v110_v44, %v126_v36 }
  0x8f   :  { %v136_v43 = vsel %vm135_vm1, %v128_v39, %v127_v38 }
  0x90   :  { %v138_v45 = vsel %vm137_vm2, %v129_v41, %v136_v43 }
  0x91   :  { %v140_v47 = vsel %vm139_vm3, %v130_v42, %v138_v45 }
  0x92   :  { %v142_v49 = vsel %vm141_vm4, %v131_v46, %v140_v47 }
  0x93   :  { %v144_v53 = vsel %vm143_vm5, %v132_v48, %v142_v49 }
  0x94   :  { %v113_v50 = vpop.xlane.xlu0 %112  ;;  %v116_v52 = vpop.xlane.xlu1 %115 }
  0x95   :  { %v133_v51 = vperm.slane %v113_v50, %v126_v36  ;;  %v134_v54 = vperm.slane %v116_v52, %v126_v36 }
  0x97   :  { %v146_v55 = vsel %vm145_vm6, %v133_v51, %v144_v53 }
  0x98   :  { %v148_v56 = vsel %vm147_vm7, %v134_v54, %v146_v55 }
  0x99   :  { %151 = vst.msk [vmem:[#allocation7] sm:$0xff] %vm150_vm8, %v148_v56 }
  0x9a   :  { %162 = dma.vmem_to_hbm [thread:$0]  %s158_s1, 128, %s160_s25, [#allocation4]  }
  0x9b   :  { %261 = dma.done.wait [#allocation4], 128  }
  0x9c   :  { %262 = vsyncadd [#allocation4], 4294967168 }
  0x9d   :  { %167 = vsyncpa [#allocation3], 1 }
  0x9e   :  { %168 = vsyncpa [#allocation6], 1 }
  0x9f   :  { %169 = vsyncpa [#allocation4], 1 }

</bundles_post_ra>
